<compile_context>
chip_gen: v7x
topology: tpu7x:2x2x1
jax: 0.10.0
libtpu: 0.0.40
codegen_flags: <defaults>
</compile_context>

<pallas_src>
import jax
import jax.numpy as jnp
from jax.experimental import pallas as pl
from jax.experimental.pallas import tpu as pltpu


# ----------------------------- kernel ---------------------------------------


def givenet_kernel(b_ref, p_ref,
                   w1_ref, b1_ref,
                   w2_ref, b2_ref,
                   w3_ref, b3_ref,
                   w4_ref, b4_ref,
                   out_ref):
    b = b_ref[...]                      # (TB, 80)  bf16
    p = p_ref[...]                      # (TB, 16)  f32 (also the legality mask)

    # boardIn: (TB,80) @ (80,256) + (1,256)
    x = jnp.dot(b, w1_ref[...], preferred_element_type=jnp.float32) + b1_ref[...]
    # piecesIn: (TB,16) @ (16,256) + (1,256)
    y = jnp.dot(p.astype(jnp.bfloat16), w2_ref[...],
                preferred_element_type=jnp.float32) + b2_ref[...]

    z = jnp.maximum(x, 0.0) + jnp.maximum(y, 0.0)         # relu(x) + relu(y)

    # middle: (TB,256) @ (256,64) + (1,64), relu
    z = jnp.dot(z.astype(jnp.bfloat16), w3_ref[...],
                preferred_element_type=jnp.float32) + b3_ref[...]
    z = jnp.maximum(z, 0.0)

    # giveOut: (TB,64) @ (64,16) + (1,16)
    logits = jnp.dot(z.astype(jnp.bfloat16), w4_ref[...],
                     preferred_element_type=jnp.float32) + b4_ref[...]

    # Stabilized exp; the softmax denominator cancels in the L1 normalization
    #   F.normalize(softmax(l) * (1-p), p=1) == F.normalize(exp(l-m)*(1-p), p=1)
    # in all non-degenerate cases, so it is skipped entirely.
    m = jnp.max(logits, axis=-1, keepdims=True)
    e = jnp.exp(logits - m)
    legal = e * (1.0 - p)
    l1 = jnp.sum(jnp.abs(legal), axis=-1, keepdims=True)
    out_ref[...] = legal * pl.reciprocal(jnp.maximum(l1, 1e-12), approx=True)


# ----------------------------- wrapper ---------------------------------------


def _round_up(n, m):
    return ((n + m - 1) // m) * m


def _default_batch_tile():
    # TB=128 fills the v5e MXU M-dim; 256 fills v6e/v7x.
    try:
        kind = jax.devices()[0].device_kind.lower()
        if "v5" in kind:
            return 128
    except Exception:
        pass
    return 256


def givenet_forward_batched(b, pieces, params, *, batch_tile=None):
    """b: (B, 80), pieces: (B, 16)  ->  (B, 16) float32."""
    (w1, b1), (w2, b2), (w3, b3), (w4, b4) = params
    B = b.shape[0]

    if batch_tile is None:
        batch_tile = _default_batch_tile()
    # 16-row granule so bf16 sublane packing stays aligned even for tiny B.
    tb = min(batch_tile, _round_up(B, 16))
    padded = _round_up(B, tb)
    pad = padded - B

    b_p = jnp.pad(b.astype(jnp.bfloat16), ((0, pad), (0, 0)))
    p_p = jnp.pad(pieces.astype(jnp.float32), ((0, pad), (0, 0)))

    const = lambda i: (0, 0)          # weights / biases resident across the grid
    batched = lambda i: (i, 0)        # activations tiled over the batch axis

    out = pl.pallas_call(
        givenet_kernel,
        out_shape=jax.ShapeDtypeStruct((padded, 16), jnp.float32),
        grid=(padded // tb,),
        in_specs=[
            pl.BlockSpec((tb, 80), batched),     # b
            pl.BlockSpec((tb, 16), batched),     # pieces
            pl.BlockSpec((80, 256), const),      # W1 (boardIn, transposed)
            pl.BlockSpec((1, 256), const),       # b1
            pl.BlockSpec((16, 256), const),      # W2 (piecesIn, transposed)
            pl.BlockSpec((1, 256), const),       # b2
            pl.BlockSpec((256, 64), const),      # W3 (middle, transposed)
            pl.BlockSpec((1, 64), const),        # b3
            pl.BlockSpec((64, 16), const),       # W4 (giveOut, transposed)
            pl.BlockSpec((1, 16), const),        # b4
        ],
        out_specs=pl.BlockSpec((tb, 16), batched),
        compiler_params=pltpu.CompilerParams(
            dimension_semantics=("parallel",)),
    )(b_p, p_p, w1, b1, w2, b2, w3, b3, w4, b4)

    return out[:B]


def givenet_forward(b, pieces, params):
    """Single-sample API matching the PyTorch module: (80,), (16,) -> (16,)."""
    out = givenet_forward_batched(b.reshape(1, 80), pieces.reshape(1, 16), params)
    return out.reshape(16)


# ----------------------------- params / reference ----------------------------


def _init_linear(key, in_features, out_features):
    """PyTorch-style uniform(-1/sqrt(fan_in), 1/sqrt(fan_in)) init.

    Weight returned transposed (in_features, out_features) in bfloat16;
    bias as a (1, out_features) float32 row.
    """
    kw, kb = jax.random.split(key)
    bound = 1.0 / jnp.sqrt(jnp.float32(in_features))
    w = jax.random.uniform(kw, (in_features, out_features),
                           minval=-bound, maxval=bound, dtype=jnp.float32)
    bias = jax.random.uniform(kb, (1, out_features),
                              minval=-bound, maxval=bound, dtype=jnp.float32)
    return w.astype(jnp.bfloat16), bias


def init_givenet_params(key):
    k1, k2, k3, k4 = jax.random.split(key, 4)
    return (
        _init_linear(k1, 80, 256),    # boardIn
        _init_linear(k2, 16, 256),    # piecesIn
        _init_linear(k3, 256, 64),    # middle
        _init_linear(k4, 64, 16),     # giveOut
    )


def givenet_ref(b, pieces, params):
    """Pure-JAX reference with the original softmax + L1 normalize."""
    (w1, b1), (w2, b2), (w3, b3), (w4, b4) = params
    bf = jnp.bfloat16
    x = jnp.dot(b.astype(bf), w1, preferred_element_type=jnp.float32) + b1
    y = jnp.dot(pieces.astype(bf), w2, preferred_element_type=jnp.float32) + b2
    z = jnp.maximum(x, 0.0) + jnp.maximum(y, 0.0)
    z = jnp.maximum(
        jnp.dot(z.astype(bf), w3, preferred_element_type=jnp.float32) + b3, 0.0)
    logits = jnp.dot(z.astype(bf), w4, preferred_element_type=jnp.float32) + b4
    give = jax.nn.softmax(logits, axis=-1)
    legal = give * (1.0 - pieces)
    l1 = jnp.sum(jnp.abs(legal), axis=-1, keepdims=True)
    return legal / jnp.maximum(l1, 1e-12)


# ----------------------------- demo ------------------------------------------


if __name__ == "__main__":
    key = jax.random.PRNGKey(0)
    k_params, k_b, k_p = jax.random.split(key, 3)

    params = init_givenet_params(k_params)

    # Small batch of board feature vectors (B, 80) and binary pieces (B, 16).
    B = 8
    b = jax.random.uniform(k_b, (B, 80), minval=0.0, maxval=5.0,
                           dtype=jnp.float32)
    pieces = (jax.random.uniform(k_p, (B, 16)) > 0.5).astype(jnp.float32)

    out = givenet_forward_batched(b, pieces, params)
    jax.block_until_ready(out)

    ref = givenet_ref(b, pieces, params)

    assert out.shape == (B, 16)
    assert bool(jnp.all(jnp.isfinite(out)))
    assert bool(jnp.allclose(out, ref, atol=5e-3, rtol=5e-3))
    # each row with at least one legal slot is L1-normalized to ~1
    assert bool(jnp.all(jnp.abs(jnp.sum(out, axis=-1) - 1.0) < 1e-2))

    print("KERNEL_OK")
</pallas_src>

<mosaic_0001>
module attributes {stable_mosaic.version = 11 : i64} {
  func.func @givenet_kernel(%arg0: i32, %arg1: memref<16x80xbf16, #tpu.memory_space<vmem>>, %arg2: memref<16x16xf32, #tpu.memory_space<vmem>>, %arg3: memref<80x256xbf16, #tpu.memory_space<vmem>>, %arg4: memref<1x256xf32, #tpu.memory_space<vmem>>, %arg5: memref<16x256xbf16, #tpu.memory_space<vmem>>, %arg6: memref<1x256xf32, #tpu.memory_space<vmem>>, %arg7: memref<256x64xbf16, #tpu.memory_space<vmem>>, %arg8: memref<1x64xf32, #tpu.memory_space<vmem>>, %arg9: memref<64x16xbf16, #tpu.memory_space<vmem>>, %arg10: memref<1x16xf32, #tpu.memory_space<vmem>>, %arg11: memref<16x16xf32, #tpu.memory_space<vmem>>) attributes {dimension_semantics = [#tpu.dimension_semantics<parallel>], iteration_bounds = array<i64: 1>, scalar_prefetch = 0 : i64, scratch_operands = 0 : i64, tpu.core_type = #tpu.core_type<tc>, window_params = [{transform_indices = @transform_0, window_bounds = array<i64: 16, 80>}, {transform_indices = @transform_1, window_bounds = array<i64: 16, 16>}, {pipeline_mode = #tpu.pipeline_mode<synchronous>, transform_indices = @transform_2, window_bounds = array<i64: 80, 256>}, {pipeline_mode = #tpu.pipeline_mode<synchronous>, transform_indices = @transform_3, window_bounds = array<i64: 1, 256>}, {pipeline_mode = #tpu.pipeline_mode<synchronous>, transform_indices = @transform_4, window_bounds = array<i64: 16, 256>}, {pipeline_mode = #tpu.pipeline_mode<synchronous>, transform_indices = @transform_5, window_bounds = array<i64: 1, 256>}, {pipeline_mode = #tpu.pipeline_mode<synchronous>, transform_indices = @transform_6, window_bounds = array<i64: 256, 64>}, {pipeline_mode = #tpu.pipeline_mode<synchronous>, transform_indices = @transform_7, window_bounds = array<i64: 1, 64>}, {pipeline_mode = #tpu.pipeline_mode<synchronous>, transform_indices = @transform_8, window_bounds = array<i64: 64, 16>}, {pipeline_mode = #tpu.pipeline_mode<synchronous>, transform_indices = @transform_9, window_bounds = array<i64: 1, 16>}, {transform_indices = @transform_10, window_bounds = array<i64: 16, 16>}]} {
    %c0 = arith.constant 0 : index
    %c0_0 = arith.constant 0 : index
    %0 = vector.load %arg1[%c0, %c0_0] : memref<16x80xbf16, #tpu.memory_space<vmem>>, vector<16x80xbf16>
    %c0_1 = arith.constant 0 : index
    %c0_2 = arith.constant 0 : index
    %1 = vector.load %arg2[%c0_1, %c0_2] : memref<16x16xf32, #tpu.memory_space<vmem>>, vector<16x16xf32>
    %c0_3 = arith.constant 0 : index
    %c0_4 = arith.constant 0 : index
    %2 = vector.load %arg3[%c0_3, %c0_4] : memref<80x256xbf16, #tpu.memory_space<vmem>>, vector<80x256xbf16>
    %cst = arith.constant dense<0.000000e+00> : vector<16x256xf32>
    %3 = tpu.matmul %0, %2, %cst {dimension_numbers = #tpu.dot_dimension_numbers<[1], [0], [0], [1], [0, 0, 1, 1], [], []>} : vector<16x80xbf16>, vector<80x256xbf16>, vector<16x256xf32> -> vector<16x256xf32>
    %c0_5 = arith.constant 0 : index
    %c0_6 = arith.constant 0 : index
    %4 = vector.load %arg4[%c0_5, %c0_6] : memref<1x256xf32, #tpu.memory_space<vmem>>, vector<1x256xf32>
    %5 = vector.broadcast %4 : vector<1x256xf32> to vector<16x256xf32>
    %6 = arith.addf %3, %5 : vector<16x256xf32>
    %7 = arith.truncf %1 : vector<16x16xf32> to vector<16x16xbf16>
    %c0_7 = arith.constant 0 : index
    %c0_8 = arith.constant 0 : index
    %8 = vector.load %arg5[%c0_7, %c0_8] : memref<16x256xbf16, #tpu.memory_space<vmem>>, vector<16x256xbf16>
    %cst_9 = arith.constant dense<0.000000e+00> : vector<16x256xf32>
    %9 = tpu.matmul %7, %8, %cst_9 {dimension_numbers = #tpu.dot_dimension_numbers<[1], [0], [0], [1], [0, 0, 1, 1], [], []>} : vector<16x16xbf16>, vector<16x256xbf16>, vector<16x256xf32> -> vector<16x256xf32>
    %c0_10 = arith.constant 0 : index
    %c0_11 = arith.constant 0 : index
    %10 = vector.load %arg6[%c0_10, %c0_11] : memref<1x256xf32, #tpu.memory_space<vmem>>, vector<1x256xf32>
    %11 = vector.broadcast %10 : vector<1x256xf32> to vector<16x256xf32>
    %12 = arith.addf %9, %11 : vector<16x256xf32>
    %cst_12 = arith.constant 0.000000e+00 : f32
    %13 = vector.broadcast %cst_12 : f32 to vector<16x256xf32>
    %14 = arith.maximumf %6, %13 : vector<16x256xf32>
    %cst_13 = arith.constant 0.000000e+00 : f32
    %15 = vector.broadcast %cst_13 : f32 to vector<16x256xf32>
    %16 = arith.maximumf %12, %15 : vector<16x256xf32>
    %17 = arith.addf %14, %16 : vector<16x256xf32>
    %18 = arith.truncf %17 : vector<16x256xf32> to vector<16x256xbf16>
    %c0_14 = arith.constant 0 : index
    %c0_15 = arith.constant 0 : index
    %19 = vector.load %arg7[%c0_14, %c0_15] : memref<256x64xbf16, #tpu.memory_space<vmem>>, vector<256x64xbf16>
    %cst_16 = arith.constant dense<0.000000e+00> : vector<16x64xf32>
    %20 = tpu.matmul %18, %19, %cst_16 {dimension_numbers = #tpu.dot_dimension_numbers<[1], [0], [0], [1], [0, 0, 1, 1], [], []>} : vector<16x256xbf16>, vector<256x64xbf16>, vector<16x64xf32> -> vector<16x64xf32>
    %c0_17 = arith.constant 0 : index
    %c0_18 = arith.constant 0 : index
    %21 = vector.load %arg8[%c0_17, %c0_18] : memref<1x64xf32, #tpu.memory_space<vmem>>, vector<1x64xf32>
    %22 = vector.broadcast %21 : vector<1x64xf32> to vector<16x64xf32>
    %23 = arith.addf %20, %22 : vector<16x64xf32>
    %cst_19 = arith.constant 0.000000e+00 : f32
    %24 = vector.broadcast %cst_19 : f32 to vector<16x64xf32>
    %25 = arith.maximumf %23, %24 : vector<16x64xf32>
    %26 = arith.truncf %25 : vector<16x64xf32> to vector<16x64xbf16>
    %c0_20 = arith.constant 0 : index
    %c0_21 = arith.constant 0 : index
    %27 = vector.load %arg9[%c0_20, %c0_21] : memref<64x16xbf16, #tpu.memory_space<vmem>>, vector<64x16xbf16>
    %cst_22 = arith.constant dense<0.000000e+00> : vector<16x16xf32>
    %28 = tpu.matmul %26, %27, %cst_22 {dimension_numbers = #tpu.dot_dimension_numbers<[1], [0], [0], [1], [0, 0, 1, 1], [], []>} : vector<16x64xbf16>, vector<64x16xbf16>, vector<16x16xf32> -> vector<16x16xf32>
    %c0_23 = arith.constant 0 : index
    %c0_24 = arith.constant 0 : index
    %29 = vector.load %arg10[%c0_23, %c0_24] : memref<1x16xf32, #tpu.memory_space<vmem>>, vector<1x16xf32>
    %30 = vector.broadcast %29 : vector<1x16xf32> to vector<16x16xf32>
    %31 = arith.addf %28, %30 : vector<16x16xf32>
    %cst_25 = arith.constant dense<0xFF800000> : vector<16xf32>
    %32 = vector.multi_reduction <maximumf>, %31, %cst_25 [1] : vector<16x16xf32> to vector<16xf32>
    %33 = vector.shape_cast %32 : vector<16xf32> to vector<16x1xf32>
    %34 = vector.broadcast %33 : vector<16x1xf32> to vector<16x16xf32>
    %35 = arith.subf %31, %34 : vector<16x16xf32>
    %36 = math.exp %35 : vector<16x16xf32>
    %cst_26 = arith.constant 1.000000e+00 : f32
    %37 = vector.broadcast %cst_26 : f32 to vector<16x16xf32>
    %38 = arith.subf %37, %1 : vector<16x16xf32>
    %39 = arith.mulf %36, %38 : vector<16x16xf32>
    %40 = math.absf %39 : vector<16x16xf32>
    %cst_27 = arith.constant dense<0.000000e+00> : vector<16xf32>
    %41 = vector.multi_reduction <add>, %40, %cst_27 [1] : vector<16x16xf32> to vector<16xf32>
    %42 = vector.shape_cast %41 : vector<16xf32> to vector<16x1xf32>
    %cst_28 = arith.constant 9.99999996E-13 : f32
    %43 = vector.broadcast %cst_28 : f32 to vector<16x1xf32>
    %44 = arith.maximumf %42, %43 : vector<16x1xf32>
    %45 = tpu.reciprocal %44 {approx = true} : vector<16x1xf32> -> vector<16x1xf32>
    %46 = vector.broadcast %45 : vector<16x1xf32> to vector<16x16xf32>
    %47 = arith.mulf %39, %46 : vector<16x16xf32>
    %c0_29 = arith.constant 0 : index
    %c0_30 = arith.constant 0 : index
    %48 = vector.load %arg11[%c0_29, %c0_30] : memref<16x16xf32, #tpu.memory_space<vmem>>, vector<16x16xf32>
    tpu.vector_store %arg11[%c0_29, %c0_30], %47 {strides = array<i32>} : memref<16x16xf32, #tpu.memory_space<vmem>>, vector<16x16xf32>,
    return
  }
  func.func @transform_0(%arg0: i32) -> (i32, i32) {
    %c0_i32 = arith.constant 0 : i32
    %c0_i32_0 = arith.constant 0 : i32
    return %arg0, %c0_i32 : i32, i32
  }
  func.func @transform_1(%arg0: i32) -> (i32, i32) {
    %c0_i32 = arith.constant 0 : i32
    %c0_i32_0 = arith.constant 0 : i32
    return %arg0, %c0_i32 : i32, i32
  }
  func.func @transform_2(%arg0: i32) -> (i32, i32) {
    %c0_i32 = arith.constant 0 : i32
    %c0_i32_0 = arith.constant 0 : i32
    %c0_i32_1 = arith.constant 0 : i32
    return %c0_i32, %c0_i32_0 : i32, i32
  }
  func.func @transform_3(%arg0: i32) -> (i32, i32) {
    %c0_i32 = arith.constant 0 : i32
    %c0_i32_0 = arith.constant 0 : i32
    %c0_i32_1 = arith.constant 0 : i32
    return %c0_i32, %c0_i32_0 : i32, i32
  }
  func.func @transform_4(%arg0: i32) -> (i32, i32) {
    %c0_i32 = arith.constant 0 : i32
    %c0_i32_0 = arith.constant 0 : i32
    %c0_i32_1 = arith.constant 0 : i32
    return %c0_i32, %c0_i32_0 : i32, i32
  }
  func.func @transform_5(%arg0: i32) -> (i32, i32) {
    %c0_i32 = arith.constant 0 : i32
    %c0_i32_0 = arith.constant 0 : i32
    %c0_i32_1 = arith.constant 0 : i32
    return %c0_i32, %c0_i32_0 : i32, i32
  }
  func.func @transform_6(%arg0: i32) -> (i32, i32) {
    %c0_i32 = arith.constant 0 : i32
    %c0_i32_0 = arith.constant 0 : i32
    %c0_i32_1 = arith.constant 0 : i32
    return %c0_i32, %c0_i32_0 : i32, i32
  }
  func.func @transform_7(%arg0: i32) -> (i32, i32) {
    %c0_i32 = arith.constant 0 : i32
    %c0_i32_0 = arith.constant 0 : i32
    %c0_i32_1 = arith.constant 0 : i32
    return %c0_i32, %c0_i32_0 : i32, i32
  }
  func.func @transform_8(%arg0: i32) -> (i32, i32) {
    %c0_i32 = arith.constant 0 : i32
    %c0_i32_0 = arith.constant 0 : i32
    %c0_i32_1 = arith.constant 0 : i32
    return %c0_i32, %c0_i32_0 : i32, i32
  }
  func.func @transform_9(%arg0: i32) -> (i32, i32) {
    %c0_i32 = arith.constant 0 : i32
    %c0_i32_0 = arith.constant 0 : i32
    %c0_i32_1 = arith.constant 0 : i32
    return %c0_i32, %c0_i32_0 : i32, i32
  }
  func.func @transform_10(%arg0: i32) -> (i32, i32) {
    %c0_i32 = arith.constant 0 : i32
    %c0_i32_0 = arith.constant 0 : i32
    return %arg0, %c0_i32 : i32, i32
  }
}

</mosaic_0001>

<bundles_post_ra>
// kernel: tpu_custom_call.1
= control target key start
LH: loop header
LB: loop body
LE: loop exit
PB: predicated region body
PF: predicated region fallthrough
CT: control target
= control target key end

     0   :  { %v716_v2 = vmov 0   ;;  %vm190_vm0 = vcmask 130048   ;;  %vm118_vm1 = vcmask 654336   ;;  %s921_s0 = inlined_call_operand.vmem [shape: bf16[16,80], index: 0, kind: input, shape index: {}]   ;;  %s922_s1 = inlined_call_operand.vmem [shape: f32[16,16], index: 1, kind: input, shape index: {}]   ;;  %s923_s2 = inlined_call_operand.vmem [shape: bf16[80,256], index: 2, kind: input, shape index: {}]   ;;  %s924_s3 = inlined_call_operand.vmem [shape: f32[1,256], index: 3, kind: input, shape index: {}]   ;;  %s925_s4 = inlined_call_operand.vmem [shape: bf16[16,256], index: 4, kind: input, shape index: {}]   ;;  %s926_s5 = inlined_call_operand.vmem [shape: f32[1,256], index: 5, kind: input, shape index: {}]   ;;  %s927_s6 = inlined_call_operand.vmem [shape: bf16[256,64], index: 6, kind: input, shape index: {}]   ;;  %s928_s7 = inlined_call_operand.vmem [shape: f32[1,64], index: 7, kind: input, shape index: {}]   ;;  %s929_s8 = inlined_call_operand.vmem [shape: bf16[64,16], index: 8, kind: input, shape index: {}]   ;;  %s930_s9 = inlined_call_operand.vmem [shape: f32[1,16], index: 9, kind: input, shape index: {}]   ;;  %s931_s10 = inlined_call_operand.hbm [shape: f32[16,16], index: 10, kind: output, shape index: {}]  }
   0x1   :  { %v645_v0 = vld [vmem:[%s923_s2 + $0x4] ss:$8 sps:$4 sm:$0xff]   ;;  %v647_v1 = vld [vmem:[%s923_s2] ss:$8 sps:$4 sm:$0xff]   ;;  %226 = vmatprep.mubr.bf16.mxu1 %v716_v2  ;;  %154 = vmatprep.mubr.bf16.mxu0 %v716_v2  ;;  %v648_v3 = vld [vmem:[%s923_s2 + $0x14] ss:$8 sps:$4 sm:$0xff]  }
   0x2   :  { %122 = vmatprep.subr.bf16.mxu0 %v645_v0  ;;  %v650_v4 = vld [vmem:[%s923_s2 + $0x10] ss:$8 sps:$4 sm:$0xff]   ;;  %v651_v5 = vld [vmem:[%s923_s2 + $0x24] ss:$8 sps:$4 sm:$0xff]   ;;  %v659_v7 = vld [vmem:[%s925_s4] ss:$8 sps:$4 sm:$0xff]  }
   0x3   :  { %123 = vmatpush1.bf16.msra.mxu0 %v647_v1  ;;  %v657_v6 = vld [vmem:[%s925_s4 + $0x4] ss:$8 sps:$4 sm:$0xff]   ;;  %v653_v8 = vld [vmem:[%s923_s2 + $0x20] ss:$8 sps:$4 sm:$0xff]   ;;  %v654_v9 = vld [vmem:[%s923_s2 + $0x34] ss:$8 sps:$4 sm:$0xff]  }
   0x4   :  { %124 = vmatprep.subr.bf16.mxu0 %v648_v3  ;;  %194 = vmatprep.subr.bf16.mxu1 %v657_v6  ;;  %v807_v10 = vld [vmem:[%s922_s1] sm:$0xff]  ;;  %v812_v11 = vld [vmem:[%s922_s1 + $0x8] sm:$0xff]  ;;  %v656_v12 = vld [vmem:[%s923_s2 + $0x30] ss:$8 sps:$4 sm:$0xff]  }
   0x5   :  { %195 = vmatpush1.bf16.msra.mxu1 %v659_v7  ;;  %v165_v13 = vpack.c.bf16 %v812_v11, %v807_v10  ;;  %v660_v14 = vld [vmem:[%s923_s2 + $0x44] ss:$8 sps:$4 sm:$0xff]   ;;  %v662_v18 = vld [vmem:[%s923_s2 + $0x40] ss:$8 sps:$4 sm:$0xff]   ;;  %v668_v20 = vld [vmem:[%s927_s6 + $0x50] sm:$0xff]  }
   0x6   :  { %v664_v15 = vld [vmem:[%s927_s6 + $0x40] sm:$0xff]   ;;  %v666_v17 = vld [vmem:[%s927_s6 + $0x48] sm:$0xff]   ;;  %v669_v22 = vld [vmem:[%s927_s6 + $0x10] sm:$0xff]  }
   0x7   :  { %125 = vmatpush1.bf16.msra.mxu0 %v650_v4  ;;  %v665_v16 = vld [vmem:[%s927_s6] sm:$0xff]   ;;  %600 = vmatprep.subr.bf16.mxu1 %v664_v15  ;;  %v667_v19 = vld [vmem:[%s927_s6 + $0x8] sm:$0xff]   ;;  %v670_v23 = vld [vmem:[%s927_s6 + $0x58] sm:$0xff]  }
   0x8   :  { %126 = vmatprep.subr.bf16.mxu0 %v651_v5  ;;  %576 = vmatmul.mubr.msk.bf16.vlgmr.msra.gmra.mrb[0].mxu1 %vm190_vm0, %v165_v13  ;;  %v663_v21 = vld [vmem:[%s921_s0] sm:$0xff]   ;;  %v671_v24 = vld [vmem:[%s927_s6 + $0x18] sm:$0xff]  }
   0x9   :  { %601 = vmatpush3.bf16.msra.mxu1 %v665_v16 }
   0xa   :  { %602 = vmatprep.subr.bf16.mxu1 %v666_v17 }
   0xb   :  { %127 = vmatpush1.bf16.msra.mxu0 %v653_v8 }
   0xc   :  { %128 = vmatprep.subr.bf16.mxu0 %v654_v9 }
   0xd   :  { %603 = vmatpush3.bf16.msra.mxu1 %v667_v19 }
   0xe   :  { %604 = vmatprep.subr.bf16.mxu1 %v668_v20 }
   0xf   :  { %129 = vmatpush1.bf16.msra.mxu0 %v656_v12 }
  0x10   :  { %130 = vmatprep.subr.bf16.mxu0 %v660_v14 }
  0x11   :  { %605 = vmatpush3.bf16.msra.mxu1 %v669_v22 }
  0x12   :  { %606 = vmatprep.subr.bf16.mxu1 %v670_v23 }
  0x13   :  { %131 = vmatpush1.bf16.msra.mxu0 %v662_v18 }
  0x15   :  { %607 = vmatpush3.bf16.msra.mxu1 %v671_v24 }
  0x16   :  { %573 = vmatmul.mubr.msk.bf16.vlgmr.msra.gmra.mrb[0].mxu0 %vm118_vm1, %v663_v21 }
  0x17   :  { %15 = vsyncpa [#allocation3], 0  ;;  %v672_v25 = vld [vmem:[%s927_s6 + $0x60] sm:$0xff]   ;;  %v674_v27 = vld [vmem:[%s927_s6 + $0x68] sm:$0xff]   ;;  %v717_v34 = vmov 0.0   ;;  %v53_v35 = vlaneseq  ;;  %vm718_vm2 = vmmov 0  }
  0x18   :  { %v673_v26 = vld [vmem:[%s927_s6 + $0x20] sm:$0xff]   ;;  %608 = vmatprep.subr.bf16.mxu1 %v672_v25  ;;  %v675_v28 = vld [vmem:[%s927_s6 + $0x28] sm:$0xff]   ;;  %v676_v29 = vld [vmem:[%s927_s6 + $0x70] sm:$0xff]   ;;  %627 = vmatprep.subr.bf16.mxu0 %v717_v34  ;;  %vm469_vm3 = vcmask 523264  }
  0x19   :  { %609 = vmatpush3.bf16.msra.mxu1 %v673_v26  ;;  %v677_v30 = vld [vmem:[%s927_s6 + $0x30] sm:$0xff]   ;;  %v678_v31 = vld [vmem:[%s927_s6 + $0x78] sm:$0xff]   ;;  %v680_v33 = vld [vmem:[%s929_s8] sm:$0xff]   ;;  %v54_v36 = vshrl.u32 %v53_v35, 7  ;;  %635 = vmatprep.mubr.msk.bf16.mxu0 %vm718_vm2, %v717_v34 }
  0x1a   :  { %610 = vmatprep.subr.bf16.mxu1 %v674_v27  ;;  %v679_v32 = vld [vmem:[%s927_s6 + $0x38] sm:$0xff]   ;;  %628 = vmatpush3.bf16.msra.mxu0 %v680_v33  ;;  %v168_v38 = vld [vmem:[%s926_s5] sm:$0x3]  ;;  %v681_v13 = vld [vmem:[%s929_s8 + $0x8] sm:$0xff]  }
  0x1b   :  { %629 = vmatprep.subr.bf16.mxu0 %v717_v34  ;;  %v55_v37 = vsub.s32 0, %v54_v36  ;;  %v59_v40 = vsub.s32 1, %v54_v36  ;;  %v51_v46 = vld [vmem:[%s924_s3] sm:$0x3]  ;;  %v682_v14 = vld [vmem:[%s929_s8 + $0x10] sm:$0xff]   ;;  %v683_v15 = vld [vmem:[%s929_s8 + $0x18] sm:$0xff]  }
  0x1c   :  { %v577_v17 = vld [vmem:[%s928_s7] ss:$0 sm:$0xff]  ;;  %s719_s7 = smov [#allocation2]  }
  0x1d   :  { %611 = vmatpush3.bf16.msra.mxu1 %v675_v28  ;;  %v173_v43 = vrot.slane %v168_v38, %v55_v37  ;;  %v177_v45 = vrot.slane %v168_v38, %v59_v40  ;;  %v56_v48 = vrot.slane %v51_v46, %v55_v37  ;;  %v60_v50 = vrot.slane %v51_v46, %v59_v40  ;;  %v594_v28 = vld [vmem:[%s930_s9] ss:$0 sm:$0xff]  ;;  %s551_s9 = sshll.u32 %s719_s7, 4  ;;  %s552_s9 = int_to_ptr.vmem [resolvable:$true] %s551_s9 }
  0x1e   :  { %612 = vmatprep.subr.bf16.mxu1 %v676_v29  ;;  %630 = vmatpush3.bf16.msra.mxu0 %v681_v13  ;;  %v527_v46 = vsub.f32 1.0, %v812_v11  ;;  %s692_s18 = scalar_lea.vmem %s552_s9, 256  ;;  %p697_p1 = scmp.lt.s32.totalorder %s552_s9, %s552_s9 }
  0x1f   :  { %631 = vmatprep.subr.bf16.mxu0 %v717_v34  ;;  %p693_p0 = scmp.ne.s32.totalorder %s552_s9, %s692_s18  ;;  %p698_p2 = scmp.lt.s32.totalorder %s692_s18, %s692_s18 }
  0x21   :  { %613 = vmatpush3.bf16.msra.mxu1 %v677_v30  ;;  %p699_p3 = por %p698_p2, %p697_p1 }
  0x22   :  { %614 = vmatprep.subr.bf16.mxu1 %v678_v31  ;;  %632 = vmatpush3.bf16.msra.mxu0 %v682_v14 }
  0x23   :  { %633 = vmatprep.subr.bf16.mxu0 %v717_v34  ;;  %p700_p4 = pnand %p699_p3, %p693_p0 }
  0x25   :  { %615 = vmatpush3.bf16.msra.mxu1 %v679_v32 }
  0x26   :  { %634 = vmatpush3.bf16.msra.mxu0 %v683_v15 }
  0xdb   :  { %v228_v39 = vpop.f32.mrb[0].mxu1 }
  0xdc   :  { %v230_v41 = vpop.f32.mrb[1].mxu1  ;;  %v229_v47 = vadd.f32 %v228_v39, %v173_v43 }
  0xdd   :  { %v232_v42 = vpop.f32.mrb[2].mxu1  ;;  %v231_v49 = vadd.f32 %v230_v41, %v177_v45 }
  0xde   :  { %v234_v44 = vpop.f32.mrb[3].mxu1  ;;  %v241_v52 = vmax.f32 %v229_v47, 0.0  ;;  %v233_v53 = vadd.f32 %v232_v42, %v173_v43  ;;  %v526_v43 = vsub.f32 1.0, %v807_v10 }
  0xdf   :  { %v242_v56 = vmax.f32 %v231_v49, 0.0  ;;  %v235_v57 = vadd.f32 %v234_v44, %v177_v45 }
  0xe0   :  { %v243_v1 = vmax.f32 %v233_v53, 0.0 }
  0xe1   :  { %v244_v4 = vmax.f32 %v235_v57, 0.0 }
  0xe9   :  { %v156_v51 = vpop.f32.mrb[0].mxu0 }
  0xea   :  { %v157_v54 = vadd.f32 %v156_v51, %v56_v48  ;;  %v158_v55 = vpop.f32.mrb[1].mxu0 }
  0xeb   :  { %v159_v58 = vadd.f32 %v158_v55, %v60_v50  ;;  %v160_v59 = vpop.f32.mrb[2].mxu0 }
  0xec   :  { %v237_v60 = vmax.f32 %v157_v54, 0.0  ;;  %v161_v61 = vadd.f32 %v160_v59, %v56_v48  ;;  %v162_v62 = vpop.f32.mrb[3].mxu0 }
  0xed   :  { %v238_v63 = vmax.f32 %v159_v58, 0.0  ;;  %v163_v0 = vadd.f32 %v162_v62, %v60_v50 }
  0xee   :  { %v245_v2 = vadd.f32 %v241_v52, %v237_v60  ;;  %v239_v3 = vmax.f32 %v161_v61, 0.0 }
  0xef   :  { %v246_v5 = vadd.f32 %v242_v56, %v238_v63  ;;  %v240_v6 = vmax.f32 %v163_v0, 0.0 }
  0xf0   :  { %v247_v7 = vadd.f32 %v243_v1, %v239_v3 }
  0xf1   :  { %v248_v8 = vadd.f32 %v244_v4, %v240_v6 }
  0xf2   :  { %v249_v9 = vpack.c.bf16 %v247_v7, %v245_v2 }
  0xf3   :  { %v250_v12 = vpack.c.bf16 %v248_v8, %v246_v5 }
  0xf5   :  { %418 = vmatprep.mubr.bf16.mxu1 %v250_v12 }
  0xf6   :  { %419 = vmatmul.mubr.bf16.vlgmr.msra.gmra.mrb[4].mxu1 %v249_v9 }
 0x1c9   :  { %v616_v16 = vpop.f32.mrb[4].mxu1 }
 0x1ca   :  { %v617_v18 = vpop.f32.mrb[5].mxu1 }
 0x1cb   :  { %v618_v19 = vadd.f32 %v617_v18, %v616_v16  ;;  %v619_v20 = vpop.f32.mrb[6].mxu1 }
 0x1cc   :  { %v620_v21 = vpop.f32.mrb[7].mxu1 }
 0x1cd   :  { %v421_v22 = vadd.f32 %v618_v19, %v577_v17  ;;  %v621_v23 = vadd.f32 %v620_v21, %v619_v20 }
 0x1cf   :  { %v424_v24 = vadd.f32 %v621_v23, %v577_v17  ;;  %v427_v25 = vmax.f32 %v421_v22, 0.0 }
 0x1d1   :  { %v428_v26 = vmax.f32 %v424_v24, 0.0 }
 0x1d3   :  { %v429_v27 = vpack.c.bf16 %v428_v26, %v427_v25 }
 0x1d5   :  { %636 = vmatmul.mubr.msk.bf16.vlgmr.msra.gmra.mrb[4].mxu0 %vm469_vm3, %v429_v27 }
 0x2a8   :  { %v507_v29 = vpop.f32.mrb[4].mxu0 }
 0x2a9   :  { %v508_v30 = vadd.f32 %v594_v28, %v507_v29  ;;  %v637_v31 = vpop.f32.mrb[5].mxu0 }
 0x2aa   :  { %v510_v32 = vpop.f32.mrb[6].mxu0 }
 0x2ab   :  { %v511_v33 = vadd.f32 %v594_v28, %v510_v32  ;;  %v638_v34 = vpop.f32.mrb[7].mxu0  ;;  %v514_v35 = vsel %vm190_vm0, %v508_v30, -inf }
 0x2ac   :  { %515 = vmax.xlane.f32.xlu0 %v514_v35 }
 0x2ad   :  { %v517_v36 = vsel %vm190_vm0, %v511_v33, -inf }
 0x2b0   :  { %518 = vmax.xlane.f32.xlu0 %v517_v36 }
 0x339   :  { %v516_v37 = vpop.xlane.xlu0 %515 }
 0x33a   :  { %v520_v38 = vsub.f32 %v508_v30, %v516_v37 }
 0x33c   :  { %v522_v39 = vmul.f32 1.442695, %v520_v38 }
 0x33d   :  { %v519_v40 = vpop.xlane.xlu0 %518 }
 0x33e   :  { %684 = vpow2.f32 %v522_v39  ;;  %v521_v41 = vsub.f32 %v511_v33, %v519_v40 }
 0x340   :  { %v524_v42 = vmul.f32 1.442695, %v521_v41 }
 0x342   :  { %686 = vpow2.f32 %v524_v42 }
 0x348   :  { %v685_v44 = vpop.eup %684 }
 0x349   :  { %v528_v45 = vmul.f32 %v685_v44, %v526_v43 }
 0x34b   :  { %v530_v47 = vand.u32 2147483647, %v528_v45 }
 0x34c   :  { %v687_v48 = vpop.eup %686 }
 0x34d   :  { %v532_v49 = vsel %vm190_vm0, %v530_v47, 0.0  ;;  %v529_v50 = vmul.f32 %v687_v48, %v527_v46 }
 0x34e   :  { %533 = vadd.xlane.f32.xlu1 %v532_v49 }
 0x34f   :  { %v531_v51 = vand.u32 2147483647, %v529_v50 }
 0x351   :  { %v535_v52 = vsel %vm190_vm0, %v531_v51, 0.0 }
 0x352   :  { %536 = vadd.xlane.f32.xlu1 %v535_v52 }
 0x3db   :  { %v534_v53 = vpop.xlane.xlu1 %533 }
 0x3dc   :  { %v538_v54 = vmax.f32 %v534_v53, 1e-12 }
 0x3de   :  { %688 = vrcp.f32 %v538_v54 }
 0x3df   :  { %v537_v55 = vpop.xlane.xlu1 %536 }
 0x3e0   :  { %v539_v56 = vmax.f32 %v537_v55, 1e-12 }
 0x3e2   :  { %690 = vrcp.f32 %v539_v56 }
 0x3e8   :  { %v689_v10 = vpop.eup %688 }
 0x3e9   :  { %v542_v57 = vmul.f32 %v689_v10, %v528_v45 }
 0x3eb   :  { %544 = vst.msk [vmem:[#allocation2] sm:$0xff] %vm190_vm0, %v542_v57 }
 0x3ec   :  { %v691_v11 = vpop.eup %690 }
 0x3ed   :  { %v543_v58 = vmul.f32 %v691_v11, %v529_v50 }
 0x3ef   :  { %545 = vst.msk [vmem:[#allocation2 + $0x8] sm:$0xff] %vm190_vm0, %v543_v58 }
 0x3f0   :  { %703 = shalt.err (!%p700_p4)
}
 0x3f1   :  { %s704_s20 = scalar_lea.hbm %s931_s10, 256 }
 0x3f2   :  { %p705_p5 = scmp.ne.s32.totalorder %s931_s10, %s704_s20  ;;  %p708_p6 = scmp.lt.u32.totalorder %s704_s20, %s931_s10 }
 0x3f4   :  { %p710_p7 = pnand %p708_p6, %p705_p5 }
 0x3f6   :  { %713 = shalt.err (!%p710_p7)
}
 0x3f7   :  { %s720_s25 = smov 128   ;;  %s721_s26 = smov 8  }
 0x3f8   :  { %557 = dma.vmem_to_hbm [thread:$0]  %s552_s9, 256, %s931_s10, [#allocation3], %s720_s25, %s720_s25, %s721_s26  }
 0x3f9   :  { %714 = dma.done.wait [#allocation3], 256  }
 0x3fa   :  { %715 = vsyncadd [#allocation3], 4294967040 }
 0x3fb   :  { %561 = vsyncpa [#allocation3], 1 }

</bundles_post_ra>
